<compile_context>
chip_gen: v6e
topology: v6e:2x2x1
jax: 0.10.0
libtpu: 0.0.40
codegen_flags: <defaults>
</compile_context>

<pallas_src>
import jax
import jax.numpy as jnp
from jax.experimental import pallas as pl
from jax.experimental.pallas import tpu as pltpu


# ---------------------------------------------------------------------------
# Parameter preparation (run ONCE at model setup, not per call).
# ---------------------------------------------------------------------------
def prepare_zoneout_lstm_params(w_ih, w_hh, b_ih, b_hh, param_dtype=jnp.float32):
    """Pre-transpose weights, fuse biases.

    Args:
      w_ih: (4H, IN)  PyTorch layout.
      w_hh: (4H, H)   PyTorch layout.
      b_ih, b_hh: (4H,)
    Returns:
      (wih_t, whh_t, w_cat, bias):
        wih_t: (IN, 4H), whh_t: (H, 4H), w_cat: (IN+H, 4H), bias: (1, 4H) f32.
    """
    wih_t = jnp.asarray(w_ih, param_dtype).T                      # (IN, 4H)
    whh_t = jnp.asarray(w_hh, param_dtype).T                      # (H, 4H)
    w_cat = jnp.concatenate([wih_t, whh_t], axis=0)               # (IN+H, 4H)
    bias = (jnp.asarray(b_ih, jnp.float32)
            + jnp.asarray(b_hh, jnp.float32)).reshape(1, -1)      # (1, 4H)
    return wih_t, whh_t, w_cat, bias


def _gate_math(gates, c, H, keep, h):
    """Shared LSTM gate + zoneout math (all f32)."""
    i_g = jax.nn.sigmoid(gates[:, 0 * H:1 * H])
    f_g = jax.nn.sigmoid(gates[:, 1 * H:2 * H])
    g_g = jnp.tanh(gates[:, 2 * H:3 * H])
    o_g = jax.nn.sigmoid(gates[:, 3 * H:4 * H])
    c_next = f_g * c + i_g * g_g
    h_next = o_g * jnp.tanh(c_next)
    # zoneout blend: prev + (1-p)*(next - prev)  (one mul saved per output vreg)
    h_new = h + keep * (h_next - h)
    c_new = c + keep * (c_next - c)
    return h_new, c_new


# ---------------------------------------------------------------------------
# Single-step cell (exact ZoneOutCell.forward semantics).
# ---------------------------------------------------------------------------
def make_cell_kernel(hidden_size: int, zoneout_rate: float):
    H = hidden_size
    keep = float(1.0 - zoneout_rate)

    def kernel(xh_ref, h_ref, c_ref, w_ref, b_ref, h_out_ref, c_out_ref):
        h = h_ref[...]
        c = c_ref[...]
        # One fused (B, IN+H) x (IN+H, 4H) MXU matmul, f32 accumulation.
        gates = jnp.dot(xh_ref[...].astype(w_ref.dtype), w_ref[...],
                        preferred_element_type=jnp.float32) + b_ref[...]
        h_new, c_new = _gate_math(gates, c, H, keep, h)
        h_out_ref[...] = h_new.astype(h_out_ref.dtype)
        c_out_ref[...] = c_new.astype(c_out_ref.dtype)

    return kernel


def zoneout_lstm_cell(x, h, c, params, zoneout_rate=0.1):
    """One ZoneOutCell(LSTMCell) step.  params from prepare_zoneout_lstm_params."""
    _, _, w_cat, bias = params
    B = x.shape[0]
    H = h.shape[1]
    xh = jnp.concatenate(
        [jnp.asarray(x, jnp.float32), jnp.asarray(h, jnp.float32)], axis=1)

    kernel = make_cell_kernel(H, zoneout_rate)
    # No grid, no index maps: everything is a single resident VMEM block.
    h_out, c_out = pl.pallas_call(
        kernel,
        out_shape=[jax.ShapeDtypeStruct((B, H), jnp.float32),
                   jax.ShapeDtypeStruct((B, H), jnp.float32)],
    )(xh, jnp.asarray(h, jnp.float32), jnp.asarray(c, jnp.float32), w_cat, bias)
    return h_out, c_out


# ---------------------------------------------------------------------------
# Fused sequence kernel: the whole time loop inside one pallas_call.
# Weights stay resident in VMEM; h/c carried in VMEM scratch across grid steps.
# ---------------------------------------------------------------------------
def make_seq_kernel(hidden_size: int, zoneout_rate: float):
    H = hidden_size
    keep = float(1.0 - zoneout_rate)

    def kernel(x_ref, h0_ref, c0_ref, wih_ref, whh_ref, b_ref,
               h_seq_ref, c_seq_ref, h_st, c_st):
        @pl.when(pl.program_id(0) == 0)
        def _():
            h_st[...] = h0_ref[...]
            c_st[...] = c0_ref[...]

        h = h_st[...]
        c = c_st[...]
        gates = jnp.dot(x_ref[...].astype(wih_ref.dtype), wih_ref[...],
                        preferred_element_type=jnp.float32)
        gates = gates + jnp.dot(h.astype(whh_ref.dtype), whh_ref[...],
                                preferred_element_type=jnp.float32)
        gates = gates + b_ref[...]

        h_new, c_new = _gate_math(gates, c, H, keep, h)
        h_st[...] = h_new
        c_st[...] = c_new
        h_seq_ref[...] = h_new.astype(h_seq_ref.dtype)
        c_seq_ref[...] = c_new.astype(c_seq_ref.dtype)

    return kernel


def zoneout_lstm_sequence(x_seq, h0, c0, params, zoneout_rate=0.1):
    """Apply ZoneOutCell over a (T, B, IN) input sequence in a single kernel.

    Returns (h_seq, c_seq), each (T, B, H); final states are [-1].
    """
    wih_t, whh_t, _, bias = params
    T, B, IN = x_seq.shape
    H = h0.shape[1]

    kernel = make_seq_kernel(H, zoneout_rate)

    grid_spec = pltpu.PrefetchScalarGridSpec(
        num_scalar_prefetch=0,
        grid=(T,),
        in_specs=[
            # per-step input slab
            pl.BlockSpec((None, B, IN), lambda t: (t, 0, 0)),
            # initial states: same block every step (loaded once)
            pl.BlockSpec((B, H), lambda t: (0, 0)),
            pl.BlockSpec((B, H), lambda t: (0, 0)),
            # weights + bias: same block every step -> resident in VMEM
            pl.BlockSpec((IN, 4 * H), lambda t: (0, 0)),
            pl.BlockSpec((H, 4 * H), lambda t: (0, 0)),
            pl.BlockSpec((1, 4 * H), lambda t: (0, 0)),
        ],
        out_specs=[
            pl.BlockSpec((None, B, H), lambda t: (t, 0, 0)),
            pl.BlockSpec((None, B, H), lambda t: (t, 0, 0)),
        ],
        scratch_shapes=[pltpu.VMEM((B, H), jnp.float32),   # carried h
                        pltpu.VMEM((B, H), jnp.float32)],  # carried c
    )

    h_seq, c_seq = pl.pallas_call(
        kernel,
        grid_spec=grid_spec,
        out_shape=[jax.ShapeDtypeStruct((T, B, H), jnp.float32),
                   jax.ShapeDtypeStruct((T, B, H), jnp.float32)],
        compiler_params=pltpu.CompilerParams(
            dimension_semantics=("arbitrary",)),   # recurrence -> sequential axis
    )(jnp.asarray(x_seq, jnp.float32), jnp.asarray(h0, jnp.float32),
      jnp.asarray(c0, jnp.float32), wih_t, whh_t, bias)
    return h_seq, c_seq


# ---------------------------------------------------------------------------
# Pure-JAX reference (matches PyTorch LSTMCell + eval-mode zoneout).
# ---------------------------------------------------------------------------
def _reference_step(x, h, c, w_ih, w_hh, b_ih, b_hh, p):
    gates = x @ w_ih.T + b_ih + h @ w_hh.T + b_hh
    H = h.shape[1]
    i = jax.nn.sigmoid(gates[:, 0 * H:1 * H])
    f = jax.nn.sigmoid(gates[:, 1 * H:2 * H])
    g = jnp.tanh(gates[:, 2 * H:3 * H])
    o = jax.nn.sigmoid(gates[:, 3 * H:4 * H])
    c_next = f * c + i * g
    h_next = o * jnp.tanh(c_next)
    return p * h + (1 - p) * h_next, p * c + (1 - p) * c_next


if __name__ == "__main__":
    B, IN, H, T = 8, 16, 32, 12
    zoneout_rate = 0.1

    key = jax.random.PRNGKey(0)
    kx, kxs, kh, kc, k1, k2, k3, k4 = jax.random.split(key, 8)

    # torch.nn.LSTMCell-style init: uniform(-1/sqrt(H), 1/sqrt(H)).
    bound = 1.0 / jnp.sqrt(jnp.float32(H))
    w_ih = jax.random.uniform(k1, (4 * H, IN), jnp.float32, -bound, bound)
    w_hh = jax.random.uniform(k2, (4 * H, H), jnp.float32, -bound, bound)
    b_ih = jax.random.uniform(k3, (4 * H,), jnp.float32, -bound, bound)
    b_hh = jax.random.uniform(k4, (4 * H,), jnp.float32, -bound, bound)

    x = jax.random.normal(kx, (B, IN), jnp.float32)
    x_seq = jax.random.normal(kxs, (T, B, IN), jnp.float32)
    h0 = jax.random.normal(kh, (B, H), jnp.float32)
    c0 = jax.random.normal(kc, (B, H), jnp.float32)

    # Prepared once (hoisted out of the per-call path).
    params = prepare_zoneout_lstm_params(w_ih, w_hh, b_ih, b_hh,
                                         param_dtype=jnp.float32)

    # --- single-step cell (original module forward) ---
    h_out, c_out = zoneout_lstm_cell(x, h0, c0, params, zoneout_rate)
    jax.block_until_ready((h_out, c_out))
    h_ref, c_ref = _reference_step(x, h0, c0, w_ih, w_hh, b_ih, b_hh,
                                   zoneout_rate)
    assert jnp.allclose(h_out, h_ref, atol=1e-5, rtol=1e-5)
    assert jnp.allclose(c_out, c_ref, atol=1e-5, rtol=1e-5)

    # --- fused sequence kernel (time loop inside the kernel) ---
    h_seq, c_seq = zoneout_lstm_sequence(x_seq, h0, c0, params, zoneout_rate)
    jax.block_until_ready((h_seq, c_seq))

    h_r, c_r = h0, c0
    for t in range(T):
        h_r, c_r = _reference_step(x_seq[t], h_r, c_r, w_ih, w_hh, b_ih, b_hh,
                                   zoneout_rate)
        assert jnp.allclose(h_seq[t], h_r, atol=1e-4, rtol=1e-4)
        assert jnp.allclose(c_seq[t], c_r, atol=1e-4, rtol=1e-4)

    print("KERNEL_OK")
</pallas_src>

<mosaic_0001>
module attributes {stable_mosaic.version = 11 : i64} {
  func.func @kernel(%arg0: memref<8x48xf32, #tpu.memory_space<vmem>>, %arg1: memref<8x32xf32, #tpu.memory_space<vmem>>, %arg2: memref<8x32xf32, #tpu.memory_space<vmem>>, %arg3: memref<48x128xf32, #tpu.memory_space<vmem>>, %arg4: memref<1x128xf32, #tpu.memory_space<vmem>>, %arg5: memref<8x32xf32, #tpu.memory_space<vmem>>, %arg6: memref<8x32xf32, #tpu.memory_space<vmem>>) attributes {dimension_semantics = [], scalar_prefetch = 0 : i64, scratch_operands = 0 : i64, tpu.core_type = #tpu.core_type<tc>} {
    %c0 = arith.constant 0 : index
    %c0_0 = arith.constant 0 : index
    %0 = vector.load %arg1[%c0, %c0_0] : memref<8x32xf32, #tpu.memory_space<vmem>>, vector<8x32xf32>
    %c0_1 = arith.constant 0 : index
    %c0_2 = arith.constant 0 : index
    %1 = vector.load %arg2[%c0_1, %c0_2] : memref<8x32xf32, #tpu.memory_space<vmem>>, vector<8x32xf32>
    %c0_3 = arith.constant 0 : index
    %c0_4 = arith.constant 0 : index
    %2 = vector.load %arg0[%c0_3, %c0_4] : memref<8x48xf32, #tpu.memory_space<vmem>>, vector<8x48xf32>
    %c0_5 = arith.constant 0 : index
    %c0_6 = arith.constant 0 : index
    %3 = vector.load %arg3[%c0_5, %c0_6] : memref<48x128xf32, #tpu.memory_space<vmem>>, vector<48x128xf32>
    %cst = arith.constant dense<0.000000e+00> : vector<8x128xf32>
    %4 = tpu.matmul %2, %3, %cst {dimension_numbers = #tpu.dot_dimension_numbers<[1], [0], [0], [1], [0, 0, 1, 1], [], []>} : vector<8x48xf32>, vector<48x128xf32>, vector<8x128xf32> -> vector<8x128xf32>
    %c0_7 = arith.constant 0 : index
    %c0_8 = arith.constant 0 : index
    %5 = vector.load %arg4[%c0_7, %c0_8] : memref<1x128xf32, #tpu.memory_space<vmem>>, vector<1x128xf32>
    %6 = vector.broadcast %5 : vector<1x128xf32> to vector<8x128xf32>
    %7 = arith.addf %4, %6 : vector<8x128xf32>
    %8 = vector.extract_strided_slice %7 {offsets = [0, 0], sizes = [8, 32], strides = [1, 1]} : vector<8x128xf32> to vector<8x32xf32>
    %9 = arith.negf %8 : vector<8x32xf32>
    %10 = math.exp %9 : vector<8x32xf32>
    %cst_9 = arith.constant 1.000000e+00 : f32
    %11 = vector.broadcast %cst_9 : f32 to vector<8x32xf32>
    %12 = arith.addf %11, %10 : vector<8x32xf32>
    %13 = arith.divf %11, %12 : vector<8x32xf32>
    %14 = vector.extract_strided_slice %7 {offsets = [0, 32], sizes = [8, 32], strides = [1, 1]} : vector<8x128xf32> to vector<8x32xf32>
    %15 = arith.negf %14 : vector<8x32xf32>
    %16 = math.exp %15 : vector<8x32xf32>
    %cst_10 = arith.constant 1.000000e+00 : f32
    %17 = vector.broadcast %cst_10 : f32 to vector<8x32xf32>
    %18 = arith.addf %17, %16 : vector<8x32xf32>
    %19 = arith.divf %17, %18 : vector<8x32xf32>
    %20 = vector.extract_strided_slice %7 {offsets = [0, 64], sizes = [8, 32], strides = [1, 1]} : vector<8x128xf32> to vector<8x32xf32>
    %21 = math.tanh %20 : vector<8x32xf32>
    %22 = vector.extract_strided_slice %7 {offsets = [0, 96], sizes = [8, 32], strides = [1, 1]} : vector<8x128xf32> to vector<8x32xf32>
    %23 = arith.negf %22 : vector<8x32xf32>
    %24 = math.exp %23 : vector<8x32xf32>
    %cst_11 = arith.constant 1.000000e+00 : f32
    %25 = vector.broadcast %cst_11 : f32 to vector<8x32xf32>
    %26 = arith.addf %25, %24 : vector<8x32xf32>
    %27 = arith.divf %25, %26 : vector<8x32xf32>
    %28 = arith.mulf %19, %1 : vector<8x32xf32>
    %29 = arith.mulf %13, %21 : vector<8x32xf32>
    %30 = arith.addf %28, %29 : vector<8x32xf32>
    %31 = math.tanh %30 : vector<8x32xf32>
    %32 = arith.mulf %27, %31 : vector<8x32xf32>
    %33 = arith.subf %32, %0 : vector<8x32xf32>
    %cst_12 = arith.constant 0.899999976 : f32
    %34 = vector.broadcast %cst_12 : f32 to vector<8x32xf32>
    %35 = arith.mulf %34, %33 : vector<8x32xf32>
    %36 = arith.addf %0, %35 : vector<8x32xf32>
    %37 = arith.subf %30, %1 : vector<8x32xf32>
    %cst_13 = arith.constant 0.899999976 : f32
    %38 = vector.broadcast %cst_13 : f32 to vector<8x32xf32>
    %39 = arith.mulf %38, %37 : vector<8x32xf32>
    %40 = arith.addf %1, %39 : vector<8x32xf32>
    %c0_14 = arith.constant 0 : index
    %c0_15 = arith.constant 0 : index
    %41 = vector.load %arg5[%c0_14, %c0_15] : memref<8x32xf32, #tpu.memory_space<vmem>>, vector<8x32xf32>
    tpu.vector_store %arg5[%c0_14, %c0_15], %36 {strides = array<i32>} : memref<8x32xf32, #tpu.memory_space<vmem>>, vector<8x32xf32>,
    %c0_16 = arith.constant 0 : index
    %c0_17 = arith.constant 0 : index
    %42 = vector.load %arg6[%c0_16, %c0_17] : memref<8x32xf32, #tpu.memory_space<vmem>>, vector<8x32xf32>
    tpu.vector_store %arg6[%c0_16, %c0_17], %40 {strides = array<i32>} : memref<8x32xf32, #tpu.memory_space<vmem>>, vector<8x32xf32>,
    return
  }
}

</mosaic_0001>

<bundles_post_ra>
// kernel: tpu_custom_call.1
= control target key start
LH: loop header
LB: loop body
LE: loop exit
PB: predicated region body
PF: predicated region fallthrough
CT: control target
= control target key end

     0   :  { %12 = vsyncpa [#allocation3], 0  ;;  %s493_s0 = inlined_call_operand.hbm [shape: f32[8,48], index: 0, kind: input, shape index: {}]   ;;  %s494_s1 = inlined_call_operand.hbm [shape: f32[8,32], index: 1, kind: input, shape index: {}]   ;;  %s495_s2 = inlined_call_operand.hbm [shape: f32[8,32], index: 2, kind: input, shape index: {}]   ;;  %s496_s3 = inlined_call_operand.hbm [shape: f32[48,128], index: 3, kind: input, shape index: {}]   ;;  %s497_s4 = inlined_call_operand.vmem [shape: f32[1,128], index: 4, kind: input, shape index: {}]   ;;  %s498_s5 = inlined_call_operand.hbm [shape: f32[8,32], index: 5, kind: output, shape index: {0}]   ;;  %s499_s6 = inlined_call_operand.hbm [shape: f32[8,32], index: 6, kind: output, shape index: {1}]  }
   0x1   :  { %13 = vsyncpa [#allocation6], 0 }
   0x2   :  { %14 = vsyncpa [#allocation9], 0 }
   0x3   :  { %15 = vsyncpa [#allocation4], 0 }
   0x4   :  { %16 = vsyncpa [#allocation12], 0  ;;  %s419_s21 = smov [#allocation5]   ;;  %s420_s23 = smov [#allocation2]  }
   0x5   :  { %s33_s22 = sshll.u32 %s419_s21, 4  ;;  %s23_s24 = sshll.u32 %s420_s23, 4  ;;  %s34_s22 = int_to_ptr.vmem [resolvable:$true] %s33_s22  ;;  %s24_s24 = int_to_ptr.vmem [resolvable:$true] %s23_s24 }
   0x6   :  { %s297_s25 = scalar_lea.vmem %s34_s22, 128  ;;  %p302_p1 = scmp.lt.s32.totalorder %s34_s22, %s34_s22 }
   0x7   :  { %p298_p0 = scmp.ne.s32.totalorder %s34_s22, %s297_s25  ;;  %p303_p2 = scmp.lt.s32.totalorder %s297_s25, %s297_s25 }
   0x9   :  { %p304_p3 = por %p303_p2, %p302_p1 }
   0xb   :  { %p305_p4 = pnand %p304_p3, %p298_p0 }
   0xd   :  { %308 = shalt.err (!%p305_p4)
}
   0xe   :  { %36 = dma.hbm_to_vmem [thread:$0]  %s494_s1, 128, %s34_s22, [#allocation6]  }
   0xf   :  { %s317_s28 = scalar_lea.vmem %s24_s24, 128  ;;  %p322_p6 = scmp.lt.s32.totalorder %s24_s24, %s24_s24 }
  0x10   :  { %p318_p5 = scmp.ne.s32.totalorder %s24_s24, %s317_s28  ;;  %p323_p7 = scmp.lt.s32.totalorder %s317_s28, %s317_s28 }
  0x12   :  { %p324_p8 = por %p323_p7, %p322_p6 }
  0x14   :  { %p325_p9 = pnand %p324_p8, %p318_p5 }
  0x16   :  { %328 = shalt.err (!%p325_p9)
}
  0x17   :  { %26 = dma.hbm_to_vmem [thread:$0]  %s493_s0, 128, %s24_s24, [#allocation3]  }
  0x18   :  { %s421_s7 = smov [#allocation7]   ;;  %s422_s9 = smov [#allocation8]  }
  0x19   :  { %s43_s8 = sshll.u32 %s421_s7, 4  ;;  %s52_s10 = sshll.u32 %s422_s9, 4  ;;  %s44_s8 = int_to_ptr.vmem [resolvable:$true] %s43_s8  ;;  %s53_s10 = int_to_ptr.vmem [resolvable:$true] %s52_s10 }
  0x1a   :  { %s337_s11 = scalar_lea.vmem %s44_s8, 128  ;;  %p342_p11 = scmp.lt.s32.totalorder %s44_s8, %s44_s8 }
  0x1b   :  { %p338_p10 = scmp.ne.s32.totalorder %s44_s8, %s337_s11  ;;  %p343_p12 = scmp.lt.s32.totalorder %s337_s11, %s337_s11 }
  0x1d   :  { %p344_p13 = por %p343_p12, %p342_p11 }
  0x1f   :  { %p345_p0 = pnand %p344_p13, %p338_p10 }
  0x21   :  { %348 = shalt.err (!%p345_p0)
}
  0x22   :  { %46 = dma.hbm_to_vmem [thread:$0]  %s495_s2, 128, %s44_s8, [#allocation6]  }
  0x23   :  { %s357_s13 = scalar_lea.vmem %s53_s10, 768  ;;  %p362_p2 = scmp.lt.s32.totalorder %s53_s10, %s53_s10 }
  0x24   :  { %p358_p1 = scmp.ne.s32.totalorder %s53_s10, %s357_s13  ;;  %p363_p3 = scmp.lt.s32.totalorder %s357_s13, %s357_s13 }
  0x26   :  { %p364_p4 = por %p363_p3, %p362_p2 }
  0x28   :  { %p365_p5 = pnand %p364_p4, %p358_p1 }
  0x2a   :  { %368 = shalt.err (!%p365_p5)
}
  0x2b   :  { %s423_s0 = smov 128   ;;  %s424_s14 = smov 8  }
  0x2c   :  { %58 = dma.hbm_to_vmem [thread:$0]  %s496_s3, 768, %s53_s10, [#allocation9], %s423_s0, %s423_s0, %s424_s14  }
  0x2d   :  { %409 = dma.done.wait [#allocation3], 128  }
  0x2e   :  { %410 = vsyncadd [#allocation3], 4294967168 }
  0x2f   :  { %411 = dma.done.wait [#allocation6], 256  }
  0x30   :  { %412 = vsyncadd [#allocation6], 4294967040 }
  0x31   :  { %413 = dma.done.wait [#allocation9], 768  }
  0x32   :  { %414 = vsyncadd [#allocation9], 4294966528  ;;  %v425_v0 = vmov 0.0   ;;  %vm426_vm0 = vmmov 0   ;;  %v81_v1 = vld [vmem:[#allocation8 + $0x28] sm:$0xff]  ;;  %v80_v2 = vld [vmem:[#allocation8 + $0x20] sm:$0xff] }
  0x33   :  { %253 = vmatprep.subr.mxu0 %v425_v0  ;;  %265 = vmatprep.mubr.msk.f32.mxu0 %vm426_vm0, %v425_v0  ;;  %v79_v3 = vld [vmem:[#allocation8 + $0x18] sm:$0xff]  ;;  %v78_v4 = vld [vmem:[#allocation8 + $0x10] sm:$0xff]  ;;  %v77_v5 = vld [vmem:[#allocation8 + $0x8] sm:$0xff]  ;;  %vm89_vm1 = vcmask 392192   ;;  %s427_s17 = smov 64   ;;  %s428_s18 = smov 32  }
  0x34   :  { %254 = vmatpush3.msra.mxu0 %v81_v1  ;;  %v76_v6 = vld [vmem:[#allocation8] sm:$0xff]  ;;  %v75_v7 = vld [vmem:[#allocation2] sm:$0xff]  ;;  %v74_v13 = vld [vmem:[#allocation7] sm:$0xff]  ;;  %s429_s19 = smov 96   ;;  %vm209_vm2 = vcmask 261120  }
  0x35   :  { %255 = vmatprep.subr.mxu0 %v425_v0  ;;  %v243_v8 = vld [vmem:[%s497_s4] ss:$0 sm:$0xff]  ;;  %v73_v17 = vld [vmem:[#allocation5] sm:$0xff]  ;;  %s430_s4 = smov [#allocation11]  }
  0x36   :  { %256 = vmatpush3.msra.mxu0 %v80_v2  ;;  %s228_s20 = sshll.u32 %s430_s4, 4  ;;  %s229_s20 = int_to_ptr.vmem [resolvable:$true] %s228_s20 }
  0x37   :  { %257 = vmatprep.subr.mxu0 %v425_v0  ;;  %s369_s21 = scalar_lea.vmem %s229_s20, 128  ;;  %p374_p7 = scmp.lt.s32.totalorder %s229_s20, %s229_s20 }
  0x38   :  { %258 = vmatpush3.msra.mxu0 %v79_v3  ;;  %p370_p6 = scmp.ne.s32.totalorder %s229_s20, %s369_s21  ;;  %p375_p8 = scmp.lt.s32.totalorder %s369_s21, %s369_s21 }
  0x39   :  { %259 = vmatprep.subr.mxu0 %v425_v0 }
  0x3a   :  { %260 = vmatpush3.msra.mxu0 %v78_v4  ;;  %p376_p9 = por %p375_p8, %p374_p7 }
  0x3b   :  { %261 = vmatprep.subr.mxu0 %v425_v0 }
  0x3c   :  { %262 = vmatpush3.msra.mxu0 %v77_v5  ;;  %p377_p10 = pnand %p376_p9, %p370_p6 }
  0x3d   :  { %263 = vmatprep.subr.mxu0 %v425_v0 }
  0x3e   :  { %264 = vmatpush3.msra.mxu0 %v76_v6 }
  0x3f   :  { %266 = vmatmul.mubr.msk.f32.vlgmr.msra.gmra.mxu0 %vm89_vm1, %v75_v7 }
  0xff   :  { %v159_v9 = vpop.f32.mrf.mxu0 }
 0x100   :  { %v160_v10 = vadd.f32 %v243_v8, %v159_v9 }
 0x101   :  { %v267_v11 = vpop.f32.mrf.mxu0 }
 0x102   :  { %281 = vtanh.f32 %v160_v10  ;;  %v245_v14 = vmul.f32 -1.442695, %v160_v10 }
 0x104   :  { %283 = vpow2.f32 %v245_v14 }
 0x10f   :  { %v282_v12 = vpop.eup %281 }
 0x110   :  { %176 = vrot.lane.b32.xlu0 %v282_v12, %s427_s17 }
 0x111   :  { %v284_v15 = vpop.eup %283 }
 0x112   :  { %v166_v16 = vadd.f32 1.0, %v284_v15 }
 0x114   :  { %171 = vrot.lane.b32.xlu0 %v74_v13, %s428_s18  ;;  %285 = vrcp.f32 %v166_v16 }
 0x118   :  { %192 = vrot.lane.b32.xlu0 %v73_v17, %s429_s19 }
 0x121   :  { %v286_v18 = vpop.eup %285 }
 0x182   :  { %v177_v19 = vpop.permute.xlu0 %176 }
 0x183   :  { %v179_v20 = vmul.f32 %v286_v18, %v177_v19 }
 0x185   :  { %181 = vrot.lane.b32.xlu1 %v179_v20, %s428_s18 }
 0x186   :  { %v172_v21 = vpop.permute.xlu0 %171 }
 0x187   :  { %v174_v22 = vmul.f32 %v286_v18, %v172_v21 }
 0x18a   :  { %v193_v28 = vpop.permute.xlu0 %192 }
 0x1f7   :  { %v182_v23 = vpop.permute.xlu1 %181 }
 0x1f8   :  { %v184_v24 = vadd.f32 %v182_v23, %v174_v22 }
 0x1fa   :  { %287 = vtanh.f32 %v184_v24  ;;  %v202_v25 = vsub.f32 %v184_v24, %v172_v21 }
 0x1fc   :  { %v203_v26 = vmul.f32 0.9, %v202_v25 }
 0x1fe   :  { %205 = vrot.lane.b32.xlu0 %v203_v26, %s429_s19 }
 0x207   :  { %v288_v27 = vpop.eup %287 }
 0x208   :  { %187 = vrot.lane.b32.xlu1 %v288_v27, %s427_s17 }
 0x270   :  { %v206_v29 = vpop.permute.xlu0 %205 }
 0x271   :  { %v208_v30 = vadd.f32 %v206_v29, %v74_v13 }
 0x273   :  { %211 = vst.msk [vmem:[#allocation11] sm:$0xff] %vm209_vm2, %v208_v30 }
 0x274   :  { %380 = shalt.err (!%p377_p10)
}
 0x275   :  { %231 = dma.vmem_to_hbm [thread:$0]  %s229_s20, 128, %s499_s6, [#allocation12]  }
 0x276   :  { %s431_s24 = smov [#allocation10]  }
 0x277   :  { %s218_s25 = sshll.u32 %s431_s24, 4  ;;  %s219_s25 = int_to_ptr.vmem [resolvable:$true] %s218_s25 }
 0x278   :  { %s389_s26 = scalar_lea.vmem %s219_s25, 128  ;;  %p394_p12 = scmp.lt.s32.totalorder %s219_s25, %s219_s25 }
 0x279   :  { %p390_p11 = scmp.ne.s32.totalorder %s219_s25, %s389_s26  ;;  %p395_p13 = scmp.lt.s32.totalorder %s389_s26, %s389_s26 }
 0x27a   :  { %v188_v31 = vpop.permute.xlu1 %187 }
 0x27b   :  { %v190_v32 = vmul.f32 %v286_v18, %v188_v31  ;;  %p396_p0 = por %p395_p13, %p394_p12 }
 0x27d   :  { %v195_v33 = vsub.f32 %v190_v32, %v193_v28  ;;  %p397_p1 = pnand %p396_p0, %p390_p11 }
 0x27f   :  { %v196_v34 = vmul.f32 0.9, %v195_v33 }
 0x281   :  { %198 = vrot.lane.b32.xlu1 %v196_v34, %s428_s18 }
 0x2f3   :  { %v199_v35 = vpop.permute.xlu1 %198 }
 0x2f4   :  { %v201_v36 = vadd.f32 %v199_v35, %v73_v17 }
 0x2f6   :  { %210 = vst.msk [vmem:[#allocation10] sm:$0xff] %vm209_vm2, %v201_v36 }
 0x2f7   :  { %400 = shalt.err (!%p397_p1)
}
 0x2f8   :  { %221 = dma.vmem_to_hbm [thread:$0]  %s219_s25, 128, %s498_s5, [#allocation4]  }
 0x2f9   :  { %415 = dma.done.wait [#allocation4], 128  }
 0x2fa   :  { %416 = vsyncadd [#allocation4], 4294967168 }
 0x2fb   :  { %417 = dma.done.wait [#allocation12], 128  }
 0x2fc   :  { %418 = vsyncadd [#allocation12], 4294967168 }
 0x2fd   :  { %238 = vsyncpa [#allocation3], 1 }
 0x2fe   :  { %239 = vsyncpa [#allocation6], 1 }
 0x2ff   :  { %240 = vsyncpa [#allocation9], 1 }
 0x300   :  { %241 = vsyncpa [#allocation4], 1 }
 0x301   :  { %242 = vsyncpa [#allocation12], 1 }

</bundles_post_ra>
